<compile_context>
chip_gen: v7x
topology: tpu7x:2x2x1
jax: 0.10.0
libtpu: 0.0.40
codegen_flags: <defaults>
</compile_context>

<pallas_src>
import jax
import jax.numpy as jnp
from jax import lax
from jax.experimental import pallas as pl
from jax.experimental.pallas import tpu as pltpu


def _make_kernel(chunk_rows: int):
    """Fused packed-MLP kernel; `chunk_rows` = packed rows per inner compute tile."""

    def kernel(fp_ref, s_ref, w1a_ref, w1b_ref, b1_ref,
               w2_ref, b2_ref, w3_ref, b3_ref, o_ref):
        gb = fp_ref.shape[0]                 # packed rows in this grid block (static)
        n_chunks = gb // chunk_rows          # static; wrapper guarantees exact division
        b3 = b3_ref[0]                       # scalar bias from SMEM

        def body(c, carry):
            r0 = pl.multiple_of(c * chunk_rows, chunk_rows)
            fp_c = fp_ref[pl.ds(r0, chunk_rows), :]   # (cg, 8*n_fp)   lane-dense
            s_c = s_ref[pl.ds(r0, chunk_rows), :]     # (cg, 32)

            # Layer 1 (packed): block-diag matmuls == per-row concat(fp, s) @ W1.
            h1 = (jnp.dot(fp_c, w1a_ref[...], preferred_element_type=jnp.float32)
                  + jnp.dot(s_c, w1b_ref[...], preferred_element_type=jnp.float32)
                  + b1_ref[...])
            h1 = jnp.maximum(h1, 0.0)                 # Dropout(d1) = identity (eval)

            # Layer 2 (packed).
            h2 = jnp.dot(h1, w2_ref[...], preferred_element_type=jnp.float32) + b2_ref[...]
            h2 = jnp.maximum(h2, 0.0)                 # Dropout(d2) = identity (eval)

            # Output layer: block-diag (8*l2, 8) matmul does the per-row segmented
            # reduction on the MXU (no cross-lane relayout needed).
            out = jnp.dot(h2, w3_ref[...], preferred_element_type=jnp.float32) + b3
            o_ref[pl.ds(r0, chunk_rows), :] = out.astype(o_ref.dtype)
            return carry

        lax.fori_loop(0, n_chunks, body, 0, unroll=(n_chunks <= 8))

    return kernel


def _block_diag(w, reps):
    """(din, dout) -> (reps*din, reps*dout) block-diagonal replication of w."""
    din, dout = w.shape
    idx = jnp.arange(reps)
    bd = jnp.zeros((reps, din, reps, dout), w.dtype)
    bd = bd.at[idx, :, idx, :].set(w)
    return bd.reshape(reps * din, reps * dout)


def visc_ann_forward(fp, Mw, Shear, T, PDI, params, *,
                     block_pack_rows=2048, chunk_pack_rows=512):
    """Visc_ANN forward (inference).

    fp: (B, n_fp); Mw/Shear/T/PDI: (B, 1). Returns (B, 1) float32.
    block_pack_rows: packed (8-row) groups per grid step  -> 8*block_pack_rows batch rows.
    chunk_pack_rows: packed groups per in-kernel compute sub-tile.
    """
    fp = fp.astype(jnp.float32)
    B, n_fp = fp.shape
    w1, b1, w2, b2, w3, b3 = params          # W stored as (in, out), biases (1, out)
    w1 = w1.astype(jnp.float32); w2 = w2.astype(jnp.float32); w3 = w3.astype(jnp.float32)
    l1, l2 = w1.shape[1], w2.shape[1]

    # Tiny (B, 4) scalar-feature pack (16 B/row vs fp's 4*n_fp B/row).
    s = jnp.concatenate([Mw, Shear, T, PDI], axis=1).astype(jnp.float32)

    # Pad only to the 8-row packing granule (and a 64-row floor so every matmul
    # has M >= 8).  Free when B % 8 == 0 and B >= 64 — keep B a multiple of 8 in
    # production to avoid the extra HBM pass entirely.
    B_pack = max(pl.cdiv(B, 8) * 8, 64)
    if B_pack != B:
        fp = jnp.pad(fp, ((0, B_pack - B), (0, 0)))
        s = jnp.pad(s, ((0, B_pack - B), (0, 0)))
    g_tot = B_pack // 8

    # Free contiguous reshapes into lane-dense packed layout.
    fp_p = fp.reshape(g_tot, 8 * n_fp)       # row g = fp[8g:8g+8, :] along lanes
    s_p = s.reshape(g_tot, 32)               # row g = s[8g:8g+8, :]  along lanes

    # 8x block-diagonal weights (precompute once per parameter set in production).
    w1a_bd = _block_diag(w1[:n_fp, :], 8)    # (8*n_fp, 8*l1)
    w1b_bd = _block_diag(w1[n_fp:, :], 8)    # (32,     8*l1)
    w2_bd = _block_diag(w2, 8)               # (8*l1,   8*l2)
    b1_p = jnp.tile(b1.reshape(1, l1).astype(jnp.float32), (1, 8))   # (1, 8*l1)
    b2_p = jnp.tile(b2.reshape(1, l2).astype(jnp.float32), (1, 8))   # (1, 8*l2)
    idx = jnp.arange(8)
    w3_bd = jnp.zeros((8, l2, 8), jnp.float32).at[idx, :, idx].set(
        w3.reshape(l2)).reshape(8 * l2, 8)                           # (8*l2, 8)
    b3_s = b3.reshape(1).astype(jnp.float32)                         # scalar -> SMEM

    # Grid over packed rows; Pallas partial edge blocks handle g_tot % gb != 0.
    gb = min(block_pack_rows, g_tot)
    gb = max(8, (gb // 8) * 8)               # sublane-aligned block (g_tot >= 8 here)
    num_blocks = pl.cdiv(g_tot, gb)

    # In-kernel compute sub-tile: only sub-tile when it divides the block evenly.
    if (chunk_pack_rows % 8 == 0 and chunk_pack_rows < gb
            and gb % chunk_pack_rows == 0):
        cg = chunk_pack_rows
    else:
        cg = gb

    resident = lambda shape: pl.BlockSpec(shape, lambda i: (0, 0))

    out = pl.pallas_call(
        _make_kernel(cg),
        grid=(num_blocks,),
        out_shape=jax.ShapeDtypeStruct((g_tot, 8), jnp.float32),
        in_specs=[
            pl.BlockSpec((gb, 8 * n_fp), lambda i: (i, 0)),        # packed fp stream
            pl.BlockSpec((gb, 32), lambda i: (i, 0)),              # packed scalars stream
            resident((8 * n_fp, 8 * l1)),                          # W1a block-diag (resident)
            resident((32, 8 * l1)),                                # W1b block-diag
            resident((1, 8 * l1)),                                 # b1 (tiled)
            resident((8 * l1, 8 * l2)),                            # W2 block-diag
            resident((1, 8 * l2)),                                 # b2 (tiled)
            resident((8 * l2, 8)),                                 # W3 block-diag
            pl.BlockSpec(memory_space=pltpu.MemorySpace.SMEM),     # b3 scalar
        ],
        out_specs=pl.BlockSpec((gb, 8), lambda i: (i, 0)),
        compiler_params=pltpu.CompilerParams(
            dimension_semantics=("parallel",),
            vmem_limit_bytes=32 * 1024 * 1024,
        ),
    )(fp_p, s_p, w1a_bd, w1b_bd, b1_p, w2_bd, b2_p, w3_bd, b3_s)

    # Packed (g_tot, 8) -> (B, 1): free contiguous reshape + slice off pad rows.
    return out.reshape(B_pack, 1)[:B]


def init_params(key, n_fp, l1, l2):
    """Deterministic init mimicking nn.Linear default (uniform +/- 1/sqrt(fan_in)).
    Weights stored as (in, out)."""
    def linear(k, fan_in, fan_out):
        kw, kb = jax.random.split(k)
        bound = 1.0 / jnp.sqrt(fan_in)
        w = jax.random.uniform(kw, (fan_in, fan_out), jnp.float32, -bound, bound)
        b = jax.random.uniform(kb, (1, fan_out), jnp.float32, -bound, bound)
        return w, b

    k1, k2, k3 = jax.random.split(key, 3)
    w1, b1 = linear(k1, n_fp + 4, l1)
    w2, b2 = linear(k2, l1, l2)
    w3, b3 = linear(k3, l2, 1)
    return (w1, b1, w2, b2, w3, b3)


def _reference(fp, Mw, Shear, T, PDI, params):
    x = jnp.concatenate([fp, Mw, Shear, T, PDI], axis=1).astype(jnp.float32)
    w1, b1, w2, b2, w3, b3 = params
    h = jnp.maximum(x @ w1 + b1, 0.0)
    h = jnp.maximum(h @ w2 + b2, 0.0)
    return h @ w3 + b3


if __name__ == "__main__":
    # Small shapes consistent with the module: fingerprint dim 16, hidden 32/32, batch 8.
    B, n_fp, l1, l2 = 8, 16, 32, 32

    key = jax.random.PRNGKey(0)
    kp, kfp, km, ks, kt, kpdi, kbig = jax.random.split(key, 7)

    params = init_params(kp, n_fp, l1, l2)

    fp = jax.random.normal(kfp, (B, n_fp), jnp.float32)
    Mw = jax.random.normal(km, (B, 1), jnp.float32)
    Shear = jax.random.normal(ks, (B, 1), jnp.float32)
    T = jax.random.normal(kt, (B, 1), jnp.float32)
    PDI = jax.random.normal(kpdi, (B, 1), jnp.float32)

    out = visc_ann_forward(fp, Mw, Shear, T, PDI, params)
    jax.block_until_ready(out)

    ref = _reference(fp, Mw, Shear, T, PDI, params)
    assert out.shape == (B, 1)
    assert jnp.allclose(out, ref, atol=1e-4, rtol=1e-5)

    # Exercise the multi-block + partial-edge-block + multi-chunk path
    # (B2 % 8 != 0 and packed rows not a multiple of the grid block).
    B2 = 300
    big = jax.random.normal(kbig, (B2, n_fp + 4), jnp.float32)
    fp2, Mw2, Sh2, T2, P2 = (big[:, :n_fp], big[:, n_fp:n_fp + 1],
                             big[:, n_fp + 1:n_fp + 2], big[:, n_fp + 2:n_fp + 3],
                             big[:, n_fp + 3:n_fp + 4])
    out2 = visc_ann_forward(fp2, Mw2, Sh2, T2, P2, params,
                            block_pack_rows=16, chunk_pack_rows=8)
    jax.block_until_ready(out2)
    ref2 = _reference(fp2, Mw2, Sh2, T2, P2, params)
    assert out2.shape == (B2, 1)
    assert jnp.allclose(out2, ref2, atol=1e-4, rtol=1e-5)

    print("KERNEL_OK")
</pallas_src>

<mosaic_0001>
module attributes {stable_mosaic.version = 11 : i64} {
  func.func @kernel(%arg0: i32, %arg1: memref<8x128xf32, #tpu.memory_space<vmem>>, %arg2: memref<8x32xf32, #tpu.memory_space<vmem>>, %arg3: memref<128x256xf32, #tpu.memory_space<vmem>>, %arg4: memref<32x256xf32, #tpu.memory_space<vmem>>, %arg5: memref<1x256xf32, #tpu.memory_space<vmem>>, %arg6: memref<256x256xf32, #tpu.memory_space<vmem>>, %arg7: memref<1x256xf32, #tpu.memory_space<vmem>>, %arg8: memref<256x8xf32, #tpu.memory_space<vmem>>, %arg9: memref<1xf32, #tpu.memory_space<smem>>, %arg10: memref<8x8xf32, #tpu.memory_space<vmem>>) attributes {dimension_semantics = [#tpu.dimension_semantics<parallel>], iteration_bounds = array<i64: 1>, scalar_prefetch = 0 : i64, scratch_operands = 0 : i64, tpu.core_type = #tpu.core_type<tc>, window_params = [{transform_indices = @transform_0, window_bounds = array<i64: 8, 128>}, {transform_indices = @transform_1, window_bounds = array<i64: 8, 32>}, {pipeline_mode = #tpu.pipeline_mode<synchronous>, transform_indices = @transform_2, window_bounds = array<i64: 128, 256>}, {pipeline_mode = #tpu.pipeline_mode<synchronous>, transform_indices = @transform_3, window_bounds = array<i64: 32, 256>}, {pipeline_mode = #tpu.pipeline_mode<synchronous>, transform_indices = @transform_4, window_bounds = array<i64: 1, 256>}, {pipeline_mode = #tpu.pipeline_mode<synchronous>, transform_indices = @transform_5, window_bounds = array<i64: 256, 256>}, {pipeline_mode = #tpu.pipeline_mode<synchronous>, transform_indices = @transform_6, window_bounds = array<i64: 1, 256>}, {pipeline_mode = #tpu.pipeline_mode<synchronous>, transform_indices = @transform_7, window_bounds = array<i64: 256, 8>}, {transform_indices = @transform_8, window_bounds = array<i64: 1>}, {transform_indices = @transform_9, window_bounds = array<i64: 8, 8>}]} {
    %c0 = arith.constant 0 : index
    %0 = memref.load %arg9[%c0] : memref<1xf32, #tpu.memory_space<smem>>
    %c0_i32 = arith.constant 0 : i32
    %c8_i32 = arith.constant 8 : i32
    %1 = arith.muli %c0_i32, %c8_i32 : i32
    %2 = tpu.assume_multiple %1, 8 : i32
    %3 = arith.index_cast %2 : i32 to index
    %c0_0 = arith.constant 0 : index
    %4 = vector.load %arg1[%3, %c0_0] : memref<8x128xf32, #tpu.memory_space<vmem>>, vector<8x128xf32>
    %5 = arith.index_cast %2 : i32 to index
    %c0_1 = arith.constant 0 : index
    %6 = vector.load %arg2[%5, %c0_1] : memref<8x32xf32, #tpu.memory_space<vmem>>, vector<8x32xf32>
    %c0_2 = arith.constant 0 : index
    %c0_3 = arith.constant 0 : index
    %7 = vector.load %arg3[%c0_2, %c0_3] : memref<128x256xf32, #tpu.memory_space<vmem>>, vector<128x256xf32>
    %cst = arith.constant dense<0.000000e+00> : vector<8x256xf32>
    %8 = tpu.matmul %4, %7, %cst {dimension_numbers = #tpu.dot_dimension_numbers<[1], [0], [0], [1], [0, 0, 1, 1], [], []>} : vector<8x128xf32>, vector<128x256xf32>, vector<8x256xf32> -> vector<8x256xf32>
    %c0_4 = arith.constant 0 : index
    %c0_5 = arith.constant 0 : index
    %9 = vector.load %arg4[%c0_4, %c0_5] : memref<32x256xf32, #tpu.memory_space<vmem>>, vector<32x256xf32>
    %cst_6 = arith.constant dense<0.000000e+00> : vector<8x256xf32>
    %10 = tpu.matmul %6, %9, %cst_6 {dimension_numbers = #tpu.dot_dimension_numbers<[1], [0], [0], [1], [0, 0, 1, 1], [], []>} : vector<8x32xf32>, vector<32x256xf32>, vector<8x256xf32> -> vector<8x256xf32>
    %11 = arith.addf %8, %10 : vector<8x256xf32>
    %c0_7 = arith.constant 0 : index
    %c0_8 = arith.constant 0 : index
    %12 = vector.load %arg5[%c0_7, %c0_8] : memref<1x256xf32, #tpu.memory_space<vmem>>, vector<1x256xf32>
    %13 = vector.broadcast %12 : vector<1x256xf32> to vector<8x256xf32>
    %14 = arith.addf %11, %13 : vector<8x256xf32>
    %cst_9 = arith.constant 0.000000e+00 : f32
    %15 = vector.broadcast %cst_9 : f32 to vector<8x256xf32>
    %16 = arith.maximumf %14, %15 : vector<8x256xf32>
    %c0_10 = arith.constant 0 : index
    %c0_11 = arith.constant 0 : index
    %17 = vector.load %arg6[%c0_10, %c0_11] : memref<256x256xf32, #tpu.memory_space<vmem>>, vector<256x256xf32>
    %cst_12 = arith.constant dense<0.000000e+00> : vector<8x256xf32>
    %18 = tpu.matmul %16, %17, %cst_12 {dimension_numbers = #tpu.dot_dimension_numbers<[1], [0], [0], [1], [0, 0, 1, 1], [], []>} : vector<8x256xf32>, vector<256x256xf32>, vector<8x256xf32> -> vector<8x256xf32>
    %c0_13 = arith.constant 0 : index
    %c0_14 = arith.constant 0 : index
    %19 = vector.load %arg7[%c0_13, %c0_14] : memref<1x256xf32, #tpu.memory_space<vmem>>, vector<1x256xf32>
    %20 = vector.broadcast %19 : vector<1x256xf32> to vector<8x256xf32>
    %21 = arith.addf %18, %20 : vector<8x256xf32>
    %cst_15 = arith.constant 0.000000e+00 : f32
    %22 = vector.broadcast %cst_15 : f32 to vector<8x256xf32>
    %23 = arith.maximumf %21, %22 : vector<8x256xf32>
    %c0_16 = arith.constant 0 : index
    %c0_17 = arith.constant 0 : index
    %24 = vector.load %arg8[%c0_16, %c0_17] : memref<256x8xf32, #tpu.memory_space<vmem>>, vector<256x8xf32>
    %cst_18 = arith.constant dense<0.000000e+00> : vector<8x8xf32>
    %25 = tpu.matmul %23, %24, %cst_18 {dimension_numbers = #tpu.dot_dimension_numbers<[1], [0], [0], [1], [0, 0, 1, 1], [], []>} : vector<8x256xf32>, vector<256x8xf32>, vector<8x8xf32> -> vector<8x8xf32>
    %26 = vector.broadcast %0 : f32 to vector<8x8xf32>
    %27 = arith.addf %25, %26 : vector<8x8xf32>
    %28 = arith.index_cast %2 : i32 to index
    %c0_19 = arith.constant 0 : index
    %29 = vector.load %arg10[%28, %c0_19] : memref<8x8xf32, #tpu.memory_space<vmem>>, vector<8x8xf32>
    tpu.vector_store %arg10[%28, %c0_19], %27 {strides = array<i32>} : memref<8x8xf32, #tpu.memory_space<vmem>>, vector<8x8xf32>,
    %c1_i32 = arith.constant 1 : i32
    return
  }
  func.func @transform_0(%arg0: i32) -> (i32, i32) {
    %c0_i32 = arith.constant 0 : i32
    %c0_i32_0 = arith.constant 0 : i32
    return %arg0, %c0_i32 : i32, i32
  }
  func.func @transform_1(%arg0: i32) -> (i32, i32) {
    %c0_i32 = arith.constant 0 : i32
    %c0_i32_0 = arith.constant 0 : i32
    return %arg0, %c0_i32 : i32, i32
  }
  func.func @transform_2(%arg0: i32) -> (i32, i32) {
    %c0_i32 = arith.constant 0 : i32
    %c0_i32_0 = arith.constant 0 : i32
    %c0_i32_1 = arith.constant 0 : i32
    return %c0_i32, %c0_i32_0 : i32, i32
  }
  func.func @transform_3(%arg0: i32) -> (i32, i32) {
    %c0_i32 = arith.constant 0 : i32
    %c0_i32_0 = arith.constant 0 : i32
    %c0_i32_1 = arith.constant 0 : i32
    return %c0_i32, %c0_i32_0 : i32, i32
  }
  func.func @transform_4(%arg0: i32) -> (i32, i32) {
    %c0_i32 = arith.constant 0 : i32
    %c0_i32_0 = arith.constant 0 : i32
    %c0_i32_1 = arith.constant 0 : i32
    return %c0_i32, %c0_i32_0 : i32, i32
  }
  func.func @transform_5(%arg0: i32) -> (i32, i32) {
    %c0_i32 = arith.constant 0 : i32
    %c0_i32_0 = arith.constant 0 : i32
    %c0_i32_1 = arith.constant 0 : i32
    return %c0_i32, %c0_i32_0 : i32, i32
  }
  func.func @transform_6(%arg0: i32) -> (i32, i32) {
    %c0_i32 = arith.constant 0 : i32
    %c0_i32_0 = arith.constant 0 : i32
    %c0_i32_1 = arith.constant 0 : i32
    return %c0_i32, %c0_i32_0 : i32, i32
  }
  func.func @transform_7(%arg0: i32) -> (i32, i32) {
    %c0_i32 = arith.constant 0 : i32
    %c0_i32_0 = arith.constant 0 : i32
    %c0_i32_1 = arith.constant 0 : i32
    return %c0_i32, %c0_i32_0 : i32, i32
  }
  func.func @transform_8(%arg0: i32) -> i32 {
    %c0_i32 = arith.constant 0 : i32
    %c0_i32_0 = arith.constant 0 : i32
    return %c0_i32 : i32
  }
  func.func @transform_9(%arg0: i32) -> (i32, i32) {
    %c0_i32 = arith.constant 0 : i32
    %c0_i32_0 = arith.constant 0 : i32
    return %arg0, %c0_i32 : i32, i32
  }
}

</mosaic_0001>

<bundles_post_ra>
// kernel: tpu_custom_call.1
= control target key start
LH: loop header
LB: loop body
LE: loop exit
PB: predicated region body
PF: predicated region fallthrough
CT: control target
= control target key end

     0   :  { %15 = vsyncpa [#allocation4], 0  ;;  %s1088_s0 = inlined_call_operand.vmem [shape: f32[8,128], index: 0, kind: input, shape index: {}]   ;;  %s1089_s1 = inlined_call_operand.vmem [shape: f32[8,32], index: 1, kind: input, shape index: {}]   ;;  %s1090_s2 = inlined_call_operand.vmem [shape: f32[128,256], index: 2, kind: input, shape index: {}]   ;;  %s1091_s3 = inlined_call_operand.hbm [shape: f32[32,256], index: 3, kind: input, shape index: {}]   ;;  %s1092_s4 = inlined_call_operand.vmem [shape: f32[1,256], index: 4, kind: input, shape index: {}]   ;;  %s1093_s5 = inlined_call_operand.hbm [shape: f32[256,256], index: 5, kind: input, shape index: {}]   ;;  %s1094_s6 = inlined_call_operand.vmem [shape: f32[1,256], index: 6, kind: input, shape index: {}]   ;;  %s1095_s7 = inlined_call_operand.vmem [shape: f32[256,8], index: 7, kind: input, shape index: {}]   ;;  %s1096_s8 = inlined_call_operand.<no memory space> [shape: f32[1], index: 8, kind: input, shape index: {}]   ;;  %s1097_s9 = inlined_call_operand.hbm [shape: f32[8,8], index: 9, kind: output, shape index: {}]  }
   0x1   :  { %16 = vsyncpa [#allocation7], 0 }
   0x2   :  { %17 = vsyncpa [#allocation5], 0  ;;  %s789_s30 = smov [#allocation3]   ;;  %s717_s13 = scalar_lea.hbm %s1091_s3, 1024 }
   0x3   :  { %s29_s10 = sshll.u32 %s789_s30, 4  ;;  %p718_p0 = scmp.ne.s32.totalorder %s1091_s3, %s717_s13  ;;  %s30_s10 = int_to_ptr.vmem [resolvable:$true] %s29_s10 }
   0x4   :  { %p721_p1 = scmp.lt.u32.totalorder %s717_s13, %s1091_s3 }
   0x6   :  { %p723_p2 = pnand %p721_p1, %p718_p0 }
   0x8   :  { %726 = shalt.err (!%p723_p2)
}
   0x9   :  { %s727_s18 = scalar_lea.vmem %s30_s10, 1024  ;;  %p732_p4 = scmp.lt.s32.totalorder %s30_s10, %s30_s10 }
   0xa   :  { %p728_p3 = scmp.ne.s32.totalorder %s30_s10, %s727_s18  ;;  %p733_p5 = scmp.lt.s32.totalorder %s727_s18, %s727_s18 }
   0xc   :  { %p734_p6 = por %p733_p5, %p732_p4 }
   0xe   :  { %p735_p7 = pnand %p734_p6, %p728_p3 }
  0x10   :  { %738 = shalt.err (!%p735_p7)
}
  0x11   :  { %s790_s19 = smov 256   ;;  %s791_s20 = smov 16  }
  0x12   :  { %35 = dma.hbm_to_vmem [thread:$0]  %s1091_s3, 1024, %s30_s10, [#allocation4], %s790_s19, %s790_s19, %s791_s20  }
  0x13   :  { %s792_s23 = smov [#allocation6]   ;;  %s739_s27 = scalar_lea.hbm %s1093_s5, 8192 }
  0x14   :  { %s43_s24 = sshll.u32 %s792_s23, 4  ;;  %p740_p8 = scmp.ne.s32.totalorder %s1093_s5, %s739_s27  ;;  %s44_s24 = int_to_ptr.vmem [resolvable:$true] %s43_s24 }
  0x15   :  { %p743_p9 = scmp.lt.u32.totalorder %s739_s27, %s1093_s5 }
  0x17   :  { %p745_p10 = pnand %p743_p9, %p740_p8 }
  0x19   :  { %748 = shalt.err (!%p745_p10)
}
  0x1a   :  { %s749_s12 = scalar_lea.vmem %s44_s24, 8192  ;;  %p754_p12 = scmp.lt.s32.totalorder %s44_s24, %s44_s24 }
  0x1b   :  { %p750_p11 = scmp.ne.s32.totalorder %s44_s24, %s749_s12  ;;  %p755_p13 = scmp.lt.s32.totalorder %s749_s12, %s749_s12 }
  0x1d   :  { %p756_p0 = por %p755_p13, %p754_p12 }
  0x1f   :  { %p757_p1 = pnand %p756_p0, %p750_p11 }
  0x21   :  { %760 = shalt.err (!%p757_p1)
}
  0x22   :  { %49 = dma.hbm_to_vmem [thread:$0]  %s1093_s5, 8192, %s44_s24, [#allocation7], %s790_s19, %s790_s19, %s791_s20  }
  0x23   :  { %783 = dma.done.wait [#allocation4], 1024  }
  0x24   :  { %784 = vsyncadd [#allocation4], 4294966272 }
  0x25   :  { %785 = dma.done.wait [#allocation7], 8192  }
  0x26   :  { %786 = vsyncadd [#allocation7], 4294959104  ;;  %v793_v0 = vmov 0.0   ;;  %v98_v1 = vld [vmem:[#allocation3 + $0x8] sm:$0xff]  ;;  %v100_v2 = vld [vmem:[#allocation3 + $0x18] sm:$0xff]  ;;  %vm105_vm0 = vcmask 261120  }
  0x27   :  { %173 = vmatprep.mubr.f32.mxu0 %v793_v0  ;;  %v97_v3 = vld [vmem:[#allocation3] sm:$0xff]  ;;  %v573_v4 = vpack.c.bf16 %v100_v2, %v98_v1  ;;  %v99_v5 = vld [vmem:[#allocation3 + $0x10] sm:$0xff]  ;;  %v102_v6 = vld [vmem:[#allocation3 + $0x28] sm:$0xff]  ;;  %s794_s22 = smov [#allocation8]   ;;  %vm519_vm1 = vcmask 64512  }
  0x28   :  { %v104_v7 = vld [vmem:[#allocation3 + $0x38] sm:$0xff]  ;;  %v575_v8 = vpack.c.bf16 %v99_v5, %v97_v3  ;;  %v101_v10 = vld [vmem:[#allocation3 + $0x20] sm:$0xff]  ;;  %v103_v11 = vld [vmem:[#allocation3 + $0x30] sm:$0xff]  ;;  %s527_s23 = sshll.u32 %s794_s22, 4  ;;  %s528_s23 = int_to_ptr.vmem [resolvable:$true] %s527_s23 }
  0x29   :  { %v577_v9 = vpack.c.bf16 %v104_v7, %v102_v6  ;;  %v66_v12 = vld [vmem:[%s1090_s2 + $0x8] sm:$0xff]  ;;  %574 = vmatprep.subr.bf16.mxu0 %v573_v4  ;;  %v68_v13 = vld [vmem:[%s1090_s2 + $0x18] sm:$0xff]  ;;  %v579_v14 = vpack.c.bf16 %v103_v11, %v101_v10  ;;  %v65_v16 = vld [vmem:[%s1090_s2] sm:$0xff]  ;;  %p766_p3 = scmp.lt.s32.totalorder %s528_s23, %s528_s23 }
  0x2a   :  { %576 = vmatpush1.bf16.msra.mxu0 %v575_v8  ;;  %v581_v15 = vpack.c.bf16 %v68_v13, %v66_v12  ;;  %v67_v17 = vld [vmem:[%s1090_s2 + $0x10] sm:$0xff]  ;;  %v70_v18 = vld [vmem:[%s1090_s2 + $0x28] sm:$0xff]  ;;  %v72_v19 = vld [vmem:[%s1090_s2 + $0x38] sm:$0xff] }
  0x2b   :  { %578 = vmatprep.subr.bf16.mxu0 %v577_v9  ;;  %v64_v20 = vld [vmem:[%s1089_s1] sm:$0xff]  ;;  %v583_v21 = vpack.c.bf16 %v67_v17, %v65_v16  ;;  %v585_v22 = vpack.c.bf16 %v72_v19, %v70_v18  ;;  %v71_v24 = vld [vmem:[%s1090_s2 + $0x30] sm:$0xff]  ;;  %v74_v25 = vld [vmem:[%s1090_s2 + $0x48] sm:$0xff] }
  0x2c   :  { %v69_v23 = vld [vmem:[%s1090_s2 + $0x20] sm:$0xff]  ;;  %v76_v26 = vld [vmem:[%s1090_s2 + $0x58] sm:$0xff]  ;;  %v75_v30 = vld [vmem:[%s1090_s2 + $0x50] sm:$0xff] }
  0x2d   :  { %v587_v27 = vpack.c.bf16 %v71_v24, %v69_v23  ;;  %v73_v28 = vld [vmem:[%s1090_s2 + $0x40] sm:$0xff]  ;;  %v589_v29 = vpack.c.bf16 %v76_v26, %v74_v25  ;;  %v78_v31 = vld [vmem:[%s1090_s2 + $0x68] sm:$0xff]  ;;  %v80_v32 = vld [vmem:[%s1090_s2 + $0x78] sm:$0xff] }
  0x2e   :  { %580 = vmatpush1.bf16.msra.mxu0 %v579_v14  ;;  %v268_v33 = vld [vmem:[#allocation6 + $0x8] sm:$0xff]  ;;  %v270_v34 = vld [vmem:[#allocation6 + $0x18] sm:$0xff]  ;;  %v267_v35 = vld [vmem:[#allocation6] sm:$0xff]  ;;  %v591_v40 = vpack.c.bf16 %v75_v30, %v73_v28  ;;  %v593_v46 = vpack.c.bf16 %v80_v32, %v78_v31 }
  0x2f   :  { %582 = vmatprep.subr.bf16.mxu0 %v581_v15  ;;  %v613_v36 = vpack.c.bf16 %v270_v34, %v268_v33  ;;  %v269_v37 = vld [vmem:[#allocation6 + $0x10] sm:$0xff]  ;;  %v272_v38 = vld [vmem:[#allocation6 + $0x28] sm:$0xff]  ;;  %v274_v39 = vld [vmem:[#allocation6 + $0x38] sm:$0xff] }
  0x30   :  { %v615_v41 = vpack.c.bf16 %v269_v37, %v267_v35  ;;  %v617_v42 = vpack.c.bf16 %v274_v39, %v272_v38  ;;  %v271_v43 = vld [vmem:[#allocation6 + $0x20] sm:$0xff]  ;;  %v273_v44 = vld [vmem:[#allocation6 + $0x30] sm:$0xff]  ;;  %v276_v45 = vld [vmem:[#allocation6 + $0x48] sm:$0xff] }
  0x31   :  { %537 = vmatmul.mubr.msk.f32.vlgmr.msra.gmra.mrb[0].mxu0 %vm105_vm0, %v64_v20  ;;  %v77_v47 = vld [vmem:[%s1090_s2 + $0x60] sm:$0xff]  ;;  %v79_v48 = vld [vmem:[%s1090_s2 + $0x70] sm:$0xff]  ;;  %614 = vmatprep.subr.bf16.mxu1 %v613_v36  ;;  %v278_v49 = vld [vmem:[#allocation6 + $0x58] sm:$0xff]  ;;  %v619_v52 = vpack.c.bf16 %v273_v44, %v271_v43 }
  0x32   :  { %584 = vmatpush1.bf16.msra.mxu0 %v583_v21  ;;  %244 = vmatprep.mubr.f32.mxu0 %v793_v0  ;;  %v82_v50 = vld [vmem:[%s1090_s2 + $0x88] sm:$0xff]  ;;  %v84_v51 = vld [vmem:[%s1090_s2 + $0x98] sm:$0xff]  ;;  %v621_v53 = vpack.c.bf16 %v278_v49, %v276_v45  ;;  %v275_v54 = vld [vmem:[#allocation6 + $0x40] sm:$0xff]  ;;  %v595_v56 = vpack.c.bf16 %v79_v48, %v77_v47 }
  0x33   :  { %586 = vmatprep.subr.bf16.mxu0 %v585_v22  ;;  %616 = vmatpush1.bf16.msra.mxu1 %v615_v41  ;;  %v277_v55 = vld [vmem:[#allocation6 + $0x50] sm:$0xff]  ;;  %v280_v57 = vld [vmem:[#allocation6 + $0x68] sm:$0xff]  ;;  %v282_v58 = vld [vmem:[#allocation6 + $0x78] sm:$0xff]  ;;  %v597_v59 = vpack.c.bf16 %v84_v51, %v82_v50 }
  0x34   :  { %618 = vmatprep.subr.bf16.mxu1 %v617_v42  ;;  %v81_v60 = vld [vmem:[%s1090_s2 + $0x80] sm:$0xff]  ;;  %v83_v61 = vld [vmem:[%s1090_s2 + $0x90] sm:$0xff]  ;;  %v86_v62 = vld [vmem:[%s1090_s2 + $0xa8] sm:$0xff]  ;;  %v623_v0 = vpack.c.bf16 %v277_v55, %v275_v54  ;;  %v625_v1 = vpack.c.bf16 %v282_v58, %v280_v57 }
  0x35   :  { %v88_v63 = vld [vmem:[%s1090_s2 + $0xb8] sm:$0xff]  ;;  %v279_v2 = vld [vmem:[#allocation6 + $0x60] sm:$0xff]  ;;  %v281_v3 = vld [vmem:[#allocation6 + $0x70] sm:$0xff]  ;;  %v599_v4 = vpack.c.bf16 %v83_v61, %v81_v60 }
  0x36   :  { %588 = vmatpush1.bf16.msra.mxu0 %v587_v27  ;;  %v284_v5 = vld [vmem:[#allocation6 + $0x88] sm:$0xff]  ;;  %v286_v6 = vld [vmem:[#allocation6 + $0x98] sm:$0xff]  ;;  %v601_v7 = vpack.c.bf16 %v88_v63, %v86_v62  ;;  %v85_v8 = vld [vmem:[%s1090_s2 + $0xa0] sm:$0xff]  ;;  %v627_v12 = vpack.c.bf16 %v281_v3, %v279_v2 }
  0x37   :  { %590 = vmatprep.subr.bf16.mxu0 %v589_v29  ;;  %620 = vmatpush1.bf16.msra.mxu1 %v619_v52  ;;  %v87_v9 = vld [vmem:[%s1090_s2 + $0xb0] sm:$0xff]  ;;  %v90_v10 = vld [vmem:[%s1090_s2 + $0xc8] sm:$0xff]  ;;  %v92_v11 = vld [vmem:[%s1090_s2 + $0xd8] sm:$0xff]  ;;  %v629_v13 = vpack.c.bf16 %v286_v6, %v284_v5 }
  0x38   :  { %622 = vmatprep.subr.bf16.mxu1 %v621_v53  ;;  %v283_v14 = vld [vmem:[#allocation6 + $0x80] sm:$0xff]  ;;  %v285_v15 = vld [vmem:[#allocation6 + $0x90] sm:$0xff]  ;;  %v603_v16 = vpack.c.bf16 %v87_v9, %v85_v8  ;;  %v288_v17 = vld [vmem:[#allocation6 + $0xa8] sm:$0xff]  ;;  %v605_v19 = vpack.c.bf16 %v92_v11, %v90_v10 }
  0x39   :  { %v290_v18 = vld [vmem:[#allocation6 + $0xb8] sm:$0xff]  ;;  %v89_v20 = vld [vmem:[%s1090_s2 + $0xc0] sm:$0xff]  ;;  %v91_v21 = vld [vmem:[%s1090_s2 + $0xd0] sm:$0xff]  ;;  %v631_v24 = vpack.c.bf16 %v285_v15, %v283_v14 }
  0x3a   :  { %592 = vmatpush1.bf16.msra.mxu0 %v591_v40  ;;  %v94_v22 = vld [vmem:[%s1090_s2 + $0xe8] sm:$0xff]  ;;  %v96_v23 = vld [vmem:[%s1090_s2 + $0xf8] sm:$0xff]  ;;  %v633_v25 = vpack.c.bf16 %v290_v18, %v288_v17  ;;  %v287_v26 = vld [vmem:[#allocation6 + $0xa0] sm:$0xff]  ;;  %v607_v28 = vpack.c.bf16 %v91_v21, %v89_v20 }
  0x3b   :  { %594 = vmatprep.subr.bf16.mxu0 %v593_v46  ;;  %624 = vmatpush1.bf16.msra.mxu1 %v623_v0  ;;  %v289_v27 = vld [vmem:[#allocation6 + $0xb0] sm:$0xff]  ;;  %v292_v29 = vld [vmem:[#allocation6 + $0xc8] sm:$0xff]  ;;  %v294_v30 = vld [vmem:[#allocation6 + $0xd8] sm:$0xff]  ;;  %v609_v31 = vpack.c.bf16 %v96_v23, %v94_v22 }
  0x3c   :  { %626 = vmatprep.subr.bf16.mxu1 %v625_v1  ;;  %v93_v32 = vld [vmem:[%s1090_s2 + $0xe0] sm:$0xff]  ;;  %v95_v33 = vld [vmem:[%s1090_s2 + $0xf0] sm:$0xff]  ;;  %v635_v34 = vpack.c.bf16 %v289_v27, %v287_v26  ;;  %v637_v35 = vpack.c.bf16 %v294_v30, %v292_v29  ;;  %v296_v39 = vld [vmem:[#allocation6 + $0xe8] sm:$0xff] }
  0x3d   :  { %v291_v36 = vld [vmem:[#allocation6 + $0xc0] sm:$0xff]  ;;  %v293_v37 = vld [vmem:[#allocation6 + $0xd0] sm:$0xff]  ;;  %v611_v38 = vpack.c.bf16 %v95_v33, %v93_v32  ;;  %v298_v40 = vld [vmem:[#allocation6 + $0xf8] sm:$0xff] }
  0x3e   :  { %596 = vmatpush1.bf16.msra.mxu0 %v595_v56  ;;  %v639_v41 = vpack.c.bf16 %v293_v37, %v291_v36  ;;  %v641_v42 = vpack.c.bf16 %v298_v40, %v296_v39  ;;  %v295_v43 = vld [vmem:[#allocation6 + $0xe0] sm:$0xff]  ;;  %v297_v44 = vld [vmem:[#allocation6 + $0xf0] sm:$0xff]  ;;  %v300_v46 = vld [vmem:[#allocation6 + $0x108] sm:$0xff] }
  0x3f   :  { %598 = vmatprep.subr.bf16.mxu0 %v597_v59  ;;  %628 = vmatpush1.bf16.msra.mxu1 %v627_v12  ;;  %v63_v45 = vld [vmem:[%s1088_s0] sm:$0xff]  ;;  %v302_v47 = vld [vmem:[#allocation6 + $0x118] sm:$0xff]  ;;  %v643_v48 = vpack.c.bf16 %v297_v44, %v295_v43  ;;  %v301_v51 = vld [vmem:[#allocation6 + $0x110] sm:$0xff] }
  0x40   :  { %630 = vmatprep.subr.bf16.mxu1 %v629_v13  ;;  %v645_v49 = vpack.c.bf16 %v302_v47, %v300_v46  ;;  %v299_v50 = vld [vmem:[#allocation6 + $0x100] sm:$0xff]  ;;  %v304_v52 = vld [vmem:[#allocation6 + $0x128] sm:$0xff]  ;;  %v306_v53 = vld [vmem:[#allocation6 + $0x138] sm:$0xff] }
  0x41   :  { %v647_v54 = vpack.c.bf16 %v301_v51, %v299_v50  ;;  %v649_v55 = vpack.c.bf16 %v306_v53, %v304_v52  ;;  %v303_v56 = vld [vmem:[#allocation6 + $0x120] sm:$0xff]  ;;  %v305_v57 = vld [vmem:[#allocation6 + $0x130] sm:$0xff]  ;;  %v308_v58 = vld [vmem:[#allocation6 + $0x148] sm:$0xff] }
  0x42   :  { %600 = vmatpush1.bf16.msra.mxu0 %v599_v4  ;;  %v310_v59 = vld [vmem:[#allocation6 + $0x158] sm:$0xff]  ;;  %v651_v60 = vpack.c.bf16 %v305_v57, %v303_v56  ;;  %v307_v62 = vld [vmem:[#allocation6 + $0x140] sm:$0xff]  ;;  %v309_v63 = vld [vmem:[#allocation6 + $0x150] sm:$0xff] }
  0x43   :  { %602 = vmatprep.subr.bf16.mxu0 %v601_v7  ;;  %632 = vmatpush1.bf16.msra.mxu1 %v631_v24  ;;  %v653_v61 = vpack.c.bf16 %v310_v59, %v308_v58  ;;  %v312_v0 = vld [vmem:[#allocation6 + $0x168] sm:$0xff]  ;;  %v314_v1 = vld [vmem:[#allocation6 + $0x178] sm:$0xff]  ;;  %v655_v2 = vpack.c.bf16 %v309_v63, %v307_v62  ;;  %v311_v4 = vld [vmem:[#allocation6 + $0x160] sm:$0xff] }
  0x44   :  { %634 = vmatprep.subr.bf16.mxu1 %v633_v25  ;;  %v657_v3 = vpack.c.bf16 %v314_v1, %v312_v0  ;;  %v313_v5 = vld [vmem:[#allocation6 + $0x170] sm:$0xff]  ;;  %v316_v6 = vld [vmem:[#allocation6 + $0x188] sm:$0xff]  ;;  %v318_v7 = vld [vmem:[#allocation6 + $0x198] sm:$0xff] }
  0x45   :  { %v659_v8 = vpack.c.bf16 %v313_v5, %v311_v4  ;;  %v661_v9 = vpack.c.bf16 %v318_v7, %v316_v6  ;;  %v315_v10 = vld [vmem:[#allocation6 + $0x180] sm:$0xff]  ;;  %v317_v11 = vld [vmem:[#allocation6 + $0x190] sm:$0xff]  ;;  %v320_v12 = vld [vmem:[#allocation6 + $0x1a8] sm:$0xff]  ;;  %v253_v6 = vlaneseq }
  0x46   :  { %604 = vmatpush1.bf16.msra.mxu0 %v603_v16  ;;  %v322_v13 = vld [vmem:[#allocation6 + $0x1b8] sm:$0xff]  ;;  %v663_v14 = vpack.c.bf16 %v317_v11, %v315_v10  ;;  %v319_v16 = vld [vmem:[#allocation6 + $0x1a0] sm:$0xff]  ;;  %v321_v17 = vld [vmem:[#allocation6 + $0x1b0] sm:$0xff] }
  0x47   :  { %606 = vmatprep.subr.bf16.mxu0 %v605_v19  ;;  %636 = vmatpush1.bf16.msra.mxu1 %v635_v34  ;;  %v665_v15 = vpack.c.bf16 %v322_v13, %v320_v12  ;;  %v324_v18 = vld [vmem:[#allocation6 + $0x1c8] sm:$0xff]  ;;  %v326_v19 = vld [vmem:[#allocation6 + $0x1d8] sm:$0xff]  ;;  %v667_v20 = vpack.c.bf16 %v321_v17, %v319_v16  ;;  %v323_v22 = vld [vmem:[#allocation6 + $0x1c0] sm:$0xff]  ;;  %v254_v7 = vshrl.u32 %v253_v6, 7 }
  0x48   :  { %638 = vmatprep.subr.bf16.mxu1 %v637_v35  ;;  %v669_v21 = vpack.c.bf16 %v326_v19, %v324_v18  ;;  %v325_v23 = vld [vmem:[#allocation6 + $0x1d0] sm:$0xff]  ;;  %v328_v25 = vld [vmem:[#allocation6 + $0x1e8] sm:$0xff]  ;;  %v330_v26 = vld [vmem:[#allocation6 + $0x1f8] sm:$0xff] }
  0x49   :  { %v671_v24 = vpack.c.bf16 %v325_v23, %v323_v22  ;;  %v673_v27 = vpack.c.bf16 %v330_v26, %v328_v25  ;;  %v329_v29 = vld [vmem:[#allocation6 + $0x1f0] sm:$0xff]  ;;  %v433_v32 = vld [vmem:[%s1095_s7 + $0x88] sm:$0xff]  ;;  %v416_v33 = vld [vmem:[%s1095_s7] sm:$0xff]  ;;  %v259_v10 = vsub.s32 1, %v254_v7 }
  0x4a   :  { %608 = vmatpush1.bf16.msra.mxu0 %v607_v28  ;;  %v327_v28 = vld [vmem:[#allocation6 + $0x1e0] sm:$0xff]  ;;  %v417_v35 = vld [vmem:[%s1095_s7 + $0x8] sm:$0xff]  ;;  %v434_v36 = vld [vmem:[%s1095_s7 + $0x90] sm:$0xff] }
  0x4b   :  { %610 = vmatprep.subr.bf16.mxu0 %v609_v31  ;;  %640 = vmatpush1.bf16.msra.mxu1 %v639_v41  ;;  %v675_v30 = vpack.c.bf16 %v329_v29, %v327_v28  ;;  %v432_v31 = vld [vmem:[%s1095_s7 + $0x80] sm:$0xff]  ;;  %v435_v37 = vld [vmem:[%s1095_s7 + $0x98] sm:$0xff]  ;;  %v418_v40 = vld [vmem:[%s1095_s7 + $0x10] sm:$0xff] }
  0x4c   :  { %642 = vmatprep.subr.bf16.mxu1 %v641_v42  ;;  %v677_v34 = vpack.c.bf16 %v433_v32, %v432_v31  ;;  %v681_v39 = vpack.c.bf16 %v435_v37, %v434_v36  ;;  %v419_v41 = vld [vmem:[%s1095_s7 + $0x18] sm:$0xff]  ;;  %v436_v42 = vld [vmem:[%s1095_s7 + $0xa0] sm:$0xff]  ;;  %v437_v43 = vld [vmem:[%s1095_s7 + $0xa8] sm:$0xff] }
  0x4d   :  { %v683_v44 = vpack.c.bf16 %v419_v41, %v418_v40  ;;  %v420_v46 = vld [vmem:[%s1095_s7 + $0x20] sm:$0xff]  ;;  %v421_v47 = vld [vmem:[%s1095_s7 + $0x28] sm:$0xff]  ;;  %v422_v52 = vld [vmem:[%s1095_s7 + $0x30] sm:$0xff] }
  0x4e   :  { %612 = vmatpush1.bf16.msra.mxu0 %v611_v38  ;;  %v679_v38 = vpack.c.bf16 %v417_v35, %v416_v33  ;;  %v687_v50 = vpack.c.bf16 %v421_v47, %v420_v46  ;;  %v423_v53 = vld [vmem:[%s1095_s7 + $0x38] sm:$0xff]  ;;  %v424_v58 = vld [vmem:[%s1095_s7 + $0x40] sm:$0xff]  ;;  %v425_v59 = vld [vmem:[%s1095_s7 + $0x48] sm:$0xff] }
  0x4f   :  { %644 = vmatpush1.bf16.msra.mxu1 %v643_v48  ;;  %678 = vmatprep.subr.bf16.mxu0 %v677_v34  ;;  %v438_v48 = vld [vmem:[%s1095_s7 + $0xb0] sm:$0xff]  ;;  %v691_v56 = vpack.c.bf16 %v423_v53, %v422_v52  ;;  %v695_v62 = vpack.c.bf16 %v425_v59, %v424_v58  ;;  %v427_v1 = vld [vmem:[%s1095_s7 + $0x58] sm:$0xff]  ;;  %v428_v19 = vld [vmem:[%s1095_s7 + $0x60] sm:$0xff] }
  0x50   :  { %646 = vmatprep.subr.bf16.mxu1 %v645_v49  ;;  %v439_v49 = vld [vmem:[%s1095_s7 + $0xb8] sm:$0xff]  ;;  %v426_v0 = vld [vmem:[%s1095_s7 + $0x50] sm:$0xff]  ;;  %v331_v28 = vld [vmem:[%s1094_s6] sm:$0x3]  ;;  %s761_s6 = scalar_lea.vmem %s528_s23, 128 }
  0x51   :  { %245 = vmatmul.mubr.f32.vlgmr.msra.gmra.mrb[0].mxu0 %v63_v45  ;;  %v685_v45 = vpack.c.bf16 %v437_v43, %v436_v42  ;;  %v689_v51 = vpack.c.bf16 %v439_v49, %v438_v48  ;;  %v699_v4 = vpack.c.bf16 %v427_v1, %v426_v0  ;;  %v446_v22 = vld [vmem:[%s1095_s7 + $0xf0] sm:$0xff]  ;;  %v447_v23 = vld [vmem:[%s1095_s7 + $0xf8] sm:$0xff]  ;;  %p762_p2 = scmp.ne.s32.totalorder %s528_s23, %s761_s6  ;;  %p767_p4 = scmp.lt.s32.totalorder %s761_s6, %s761_s6 }
  0x52   :  { %680 = vmatpush3.bf16.msra.mxu0 %v679_v38  ;;  %v430_v25 = vld [vmem:[%s1095_s7 + $0x70] sm:$0xff]  ;;  %v431_v26 = vld [vmem:[%s1095_s7 + $0x78] sm:$0xff]  ;;  %v448_v38 = vstv %s1096_s8 }
  0x53   :  { %648 = vmatpush1.bf16.msra.mxu1 %v647_v54  ;;  %682 = vmatprep.subr.bf16.mxu0 %v681_v39  ;;  %v440_v54 = vld [vmem:[%s1095_s7 + $0xc0] sm:$0xff]  ;;  %p768_p5 = por %p767_p4, %p766_p3 }
  0x54   :  { %650 = vmatprep.subr.bf16.mxu1 %v649_v55  ;;  %v441_v55 = vld [vmem:[%s1095_s7 + $0xc8] sm:$0xff] }
  0x55   :  { %v693_v57 = vpack.c.bf16 %v441_v55, %v440_v54  ;;  %p769_p6 = pnand %p768_p5, %p762_p2 }
  0x56   :  { %684 = vmatpush3.bf16.msra.mxu0 %v683_v44 }
  0x57   :  { %652 = vmatpush1.bf16.msra.mxu1 %v651_v60  ;;  %686 = vmatprep.subr.bf16.mxu0 %v685_v45  ;;  %v442_v60 = vld [vmem:[%s1095_s7 + $0xd0] sm:$0xff] }
  0x58   :  { %654 = vmatprep.subr.bf16.mxu1 %v653_v61  ;;  %v443_v61 = vld [vmem:[%s1095_s7 + $0xd8] sm:$0xff] }
  0x59   :  { %v697_v63 = vpack.c.bf16 %v443_v61, %v442_v60 }
  0x5a   :  { %688 = vmatpush3.bf16.msra.mxu0 %v687_v50 }
  0x5b   :  { %656 = vmatpush1.bf16.msra.mxu1 %v655_v2  ;;  %690 = vmatprep.subr.bf16.mxu0 %v689_v51  ;;  %v444_v2 = vld [vmem:[%s1095_s7 + $0xe0] sm:$0xff] }
  0x5c   :  { %658 = vmatprep.subr.bf16.mxu1 %v657_v3  ;;  %v445_v3 = vld [vmem:[%s1095_s7 + $0xe8] sm:$0xff] }
  0x5d   :  { %v701_v5 = vpack.c.bf16 %v445_v3, %v444_v2 }
  0x5e   :  { %692 = vmatpush3.bf16.msra.mxu0 %v691_v56 }
  0x5f   :  { %660 = vmatpush1.bf16.msra.mxu1 %v659_v8  ;;  %694 = vmatprep.subr.bf16.mxu0 %v693_v57  ;;  %v255_v8 = vsub.s32 0, %v254_v7 }
  0x60   :  { %662 = vmatprep.subr.bf16.mxu1 %v661_v9  ;;  %v251_v9 = vld [vmem:[%s1092_s4] sm:$0x3] }
  0x61   :  { %v256_v11 = vrot.slane %v251_v9, %v255_v8  ;;  %v260_v12 = vrot.slane %v251_v9, %v259_v10  ;;  %v336_v29 = vrot.slane %v331_v28, %v255_v8 }
  0x62   :  { %696 = vmatpush3.bf16.msra.mxu0 %v695_v62 }
  0x63   :  { %664 = vmatpush1.bf16.msra.mxu1 %v663_v14  ;;  %698 = vmatprep.subr.bf16.mxu0 %v697_v63 }
  0x64   :  { %666 = vmatprep.subr.bf16.mxu1 %v665_v15 }
  0x66   :  { %700 = vmatpush3.bf16.msra.mxu0 %v699_v4 }
  0x67   :  { %668 = vmatpush1.bf16.msra.mxu1 %v667_v20  ;;  %702 = vmatprep.subr.bf16.mxu0 %v701_v5  ;;  %v429_v20 = vld [vmem:[%s1095_s7 + $0x68] sm:$0xff] }
  0x68   :  { %670 = vmatprep.subr.bf16.mxu1 %v669_v21  ;;  %v703_v21 = vpack.c.bf16 %v429_v20, %v428_v19 }
  0x6a   :  { %704 = vmatpush3.bf16.msra.mxu0 %v703_v21 }
  0x6b   :  { %672 = vmatpush1.bf16.msra.mxu1 %v671_v24  ;;  %v705_v24 = vpack.c.bf16 %v447_v23, %v446_v22 }
  0x6c   :  { %674 = vmatprep.subr.bf16.mxu1 %v673_v27  ;;  %v707_v27 = vpack.c.bf16 %v431_v26, %v430_v25 }
  0x6d   :  { %706 = vmatprep.subr.bf16.mxu0 %v705_v24 }
  0x6e   :  { %708 = vmatpush3.bf16.msra.mxu0 %v707_v27 }
  0x6f   :  { %676 = vmatpush1.bf16.msra.mxu1 %v675_v30  ;;  %v340_v30 = vrot.slane %v331_v28, %v259_v10 }
 0x124   :  { %v246_v13 = vpop.f32.mrb[0].mxu0 }
 0x125   :  { %v263_v14 = vadd.f32 %v256_v11, %v246_v13  ;;  %v248_v15 = vpop.f32.mrb[1].mxu0 }
 0x126   :  { %v264_v16 = vadd.f32 %v260_v12, %v248_v15 }
 0x127   :  { %v265_v18 = vmax.f32 %v263_v14, 0.0 }
 0x128   :  { %v266_v17 = vmax.f32 %v264_v16, 0.0 }
 0x12a   :  { %407 = vmatprep.mubr.f32.mxu1 %v266_v17 }
 0x12b   :  { %408 = vmatmul.mubr.f32.vlgmr.msra.gmra.mrb[0].mxu1 %v265_v18 }
 0x1fe   :  { %v409_v31 = vpop.f32.mrb[0].mxu1 }
 0x1ff   :  { %v410_v32 = vadd.f32 %v409_v31, %v336_v29  ;;  %v411_v33 = vpop.f32.mrb[1].mxu1 }
 0x200   :  { %v412_v34 = vadd.f32 %v411_v33, %v340_v30 }
 0x201   :  { %v414_v36 = vmax.f32 %v410_v32, 0.0 }
 0x202   :  { %v415_v35 = vmax.f32 %v412_v34, 0.0 }
 0x204   :  { %513 = vmatprep.mubr.f32.mxu0 %v415_v35 }
 0x205   :  { %514 = vmatmul.mubr.f32.vlgmr.msra.gmra.mrb[2].mxu0 %v414_v36 }
 0x2d8   :  { %v570_v37 = vpop.f32.mrb[2].mxu0 }
 0x2d9   :  { %v571_v39 = vpop.f32.mrb[3].mxu0 }
 0x2da   :  { %v572_v40 = vadd.f32 %v571_v39, %v570_v37 }
 0x2dc   :  { %v516_v41 = vadd.f32 %v572_v40, %v448_v38 }
 0x2de   :  { %520 = vst.msk [vmem:[#allocation8] sm:$0xff] %vm519_vm1, %v516_v41 }
 0x2df   :  { %772 = shalt.err (!%p769_p6)
}
 0x2e0   :  { %s773_s26 = scalar_lea.hbm %s1097_s9, 128 }
 0x2e1   :  { %p774_p7 = scmp.ne.s32.totalorder %s1097_s9, %s773_s26  ;;  %p777_p8 = scmp.lt.u32.totalorder %s773_s26, %s1097_s9 }
 0x2e3   :  { %p779_p9 = pnand %p777_p8, %p774_p7 }
 0x2e5   :  { %782 = shalt.err (!%p779_p9)
}
 0x2e6   :  { %530 = dma.vmem_to_hbm [thread:$0]  %s528_s23, 128, %s1097_s9, [#allocation5]  }
 0x2e7   :  { %787 = dma.done.wait [#allocation5], 128  }
 0x2e8   :  { %788 = vsyncadd [#allocation5], 4294967168 }
 0x2e9   :  { %534 = vsyncpa [#allocation4], 1 }
 0x2ea   :  { %535 = vsyncpa [#allocation7], 1 }
 0x2eb   :  { %536 = vsyncpa [#allocation5], 1 }

</bundles_post_ra>
